<compile_context>
chip_gen: v7x
topology: tpu7x:2x2x1
jax: 0.10.0
libtpu: 0.0.40
codegen_flags: <defaults>
</compile_context>

<pallas_src>
import functools

import jax
import jax.numpy as jnp
from jax.experimental import pallas as pl
from jax.experimental.pallas import tpu as pltpu


# ----------------------------------------------------------------------------
# Fused Bottleneck kernel (one image per grid step, channels-first (C, H*W))
# ----------------------------------------------------------------------------
def _bottleneck_kernel(x_ref, w1_ref, b1_ref, w2_ref, b2_ref, w3_ref, b3_ref,
                       o_ref, *, H, W):
    HW = H * W
    P = w1_ref.shape[0]                                 # planes

    x_f32 = x_ref[0]                                    # (Cin, HW) f32
    xb = x_f32.astype(jnp.bfloat16)

    # ---- conv1 (1x1) + BN1 + ReLU -------------------------------------------
    y1 = jnp.dot(w1_ref[...], xb, preferred_element_type=jnp.float32)
    y1 = jnp.maximum(y1 + b1_ref[...], 0.0)             # (P, HW) f32
    y1b = y1.astype(jnp.bfloat16)

    # ---- conv2 (3x3, pad=1) + BN2 + ReLU via single im2col matmul ------------
    # w-coordinate of every flattened spatial position, used to zero the taps
    # that cross the left/right image border (zero padding semantics).
    lane = jax.lax.broadcasted_iota(jnp.int32, (P, HW), 1)
    wcoord = lane % W

    taps = []
    for oy in (-1, 0, 1):
        for ox in (-1, 0, 1):
            delta = oy * W + ox                          # flat-index shift
            if delta > 0:
                sh = jnp.concatenate(
                    [y1b[:, delta:], jnp.zeros((P, delta), jnp.bfloat16)],
                    axis=1)
            elif delta < 0:
                sh = jnp.concatenate(
                    [jnp.zeros((P, -delta), jnp.bfloat16), y1b[:, :delta]],
                    axis=1)
            else:
                sh = y1b
            if ox != 0:
                valid = jnp.logical_and(wcoord + ox >= 0, wcoord + ox < W)
                sh = jnp.where(valid, sh, jnp.zeros_like(sh))
            taps.append(sh)
    patches = jnp.concatenate(taps, axis=0)              # (9P, HW) bf16

    y2 = jnp.dot(w2_ref[...], patches, preferred_element_type=jnp.float32)
    y2 = jnp.maximum(y2 + b2_ref[...], 0.0).astype(jnp.bfloat16)   # (P, HW)

    # ---- conv3 (1x1) + BN3, residual add, ReLU --------------------------------
    y3 = jnp.dot(w3_ref[...], y2, preferred_element_type=jnp.float32)
    y3 = y3 + b3_ref[...]                                 # (Cout, HW) f32
    out = jnp.maximum(y3 + x_f32, 0.0)                    # identity = x (f32)
    o_ref[0] = out.astype(o_ref.dtype)


# ----------------------------------------------------------------------------
# Public wrapper: NCHW in, NCHW out (no transposes, only free reshapes)
# ----------------------------------------------------------------------------
@jax.jit
def bottleneck_forward(x_nchw, kp):
    N, Cin, H, W = x_nchw.shape
    P = kp["w1"].shape[0]
    Cout = kp["w3"].shape[0]
    assert Cin == Cout, "default Bottleneck path needs inplanes == planes*4"
    HW = H * W
    x2 = x_nchw.reshape(N, Cin, HW)                      # free reshape (contig)

    kern = functools.partial(_bottleneck_kernel, H=H, W=W)
    out = pl.pallas_call(
        kern,
        out_shape=jax.ShapeDtypeStruct((N, Cout, HW), jnp.float32),
        grid=(N,),
        in_specs=[
            pl.BlockSpec((1, Cin, HW), lambda n: (n, 0, 0)),
            pl.BlockSpec((P, Cin), lambda n: (0, 0)),
            pl.BlockSpec((P, 1), lambda n: (0, 0)),
            pl.BlockSpec((P, 9 * P), lambda n: (0, 0)),
            pl.BlockSpec((P, 1), lambda n: (0, 0)),
            pl.BlockSpec((Cout, P), lambda n: (0, 0)),
            pl.BlockSpec((Cout, 1), lambda n: (0, 0)),
        ],
        out_specs=pl.BlockSpec((1, Cout, HW), lambda n: (n, 0, 0)),
        compiler_params=pltpu.CompilerParams(
            dimension_semantics=("parallel",),
            vmem_limit_bytes=32 * 1024 * 1024),
    )(x2, kp["w1"], kp["b1"], kp["w2"], kp["b2"], kp["w3"], kp["b3"])
    return out.reshape(N, Cout, H, W)


# ----------------------------------------------------------------------------
# Parameter construction (PyTorch-style raw params) + BN folding for the kernel
# ----------------------------------------------------------------------------
def init_params(key, inplanes, planes, expansion=4, eps=1e-5):
    Cout = planes * expansion
    ks = jax.random.split(key, 6)

    def bn_params(k, c):
        k1, k2, k3, k4 = jax.random.split(k, 4)
        gamma = 1.0 + 0.1 * jax.random.normal(k1, (c,), jnp.float32)
        beta = 0.1 * jax.random.normal(k2, (c,), jnp.float32)
        mean = 0.1 * jax.random.normal(k3, (c,), jnp.float32)
        var = 0.5 + 0.1 * jnp.abs(jax.random.normal(k4, (c,), jnp.float32))
        return gamma, beta, mean, var

    w1 = 0.05 * jax.random.normal(ks[0], (planes, inplanes, 1, 1), jnp.float32)
    w2 = 0.05 * jax.random.normal(ks[1], (planes, planes, 3, 3), jnp.float32)
    w3 = 0.05 * jax.random.normal(ks[2], (Cout, planes, 1, 1), jnp.float32)
    bn1 = bn_params(ks[3], planes)
    bn2 = bn_params(ks[4], planes)
    bn3 = bn_params(ks[5], Cout)

    raw = dict(w1=w1, w2=w2, w3=w3, bn1=bn1, bn2=bn2, bn3=bn3)

    def fold(w, bn):
        gamma, beta, mean, var = bn
        s = gamma / jnp.sqrt(var + eps)
        return w * s[:, None, None, None], beta - s * mean

    w1f, b1f = fold(w1, bn1)
    w2f, b2f = fold(w2, bn2)
    w3f, b3f = fold(w3, bn3)

    kernel_params = dict(
        w1=w1f.reshape(planes, inplanes).astype(jnp.bfloat16),
        b1=b1f.reshape(planes, 1),
        # reorder OIHW -> (O, ky, kx, I) to match the im2col tap order (oy, ox, c)
        w2=jnp.transpose(w2f, (0, 2, 3, 1)).reshape(planes, 9 * planes)
            .astype(jnp.bfloat16),
        b2=b2f.reshape(planes, 1),
        w3=w3f.reshape(Cout, planes).astype(jnp.bfloat16),
        b3=b3f.reshape(Cout, 1),
    )
    return raw, kernel_params


# ----------------------------------------------------------------------------
# Pure-JAX reference (raw weights + explicit eval-mode BatchNorm)
# ----------------------------------------------------------------------------
def bottleneck_reference(x, raw, eps=1e-5):
    def conv(x, w, pad):
        return jax.lax.conv_general_dilated(
            x, w, window_strides=(1, 1), padding=[(pad, pad), (pad, pad)],
            dimension_numbers=("NCHW", "OIHW", "NCHW"))

    def bn(x, p):
        gamma, beta, mean, var = p
        s = (gamma / jnp.sqrt(var + eps))[None, :, None, None]
        return (x - mean[None, :, None, None]) * s + beta[None, :, None, None]

    out = jax.nn.relu(bn(conv(x, raw["w1"], 0), raw["bn1"]))
    out = jax.nn.relu(bn(conv(out, raw["w2"], 1), raw["bn2"]))
    out = bn(conv(out, raw["w3"], 0), raw["bn3"])
    return jax.nn.relu(out + x)


if __name__ == "__main__":
    key = jax.random.PRNGKey(0)
    k_param, k_x = jax.random.split(key)

    N, inplanes, planes, H, W = 2, 64, 16, 16, 16        # Bottleneck(64, 16)
    raw, kparams = init_params(k_param, inplanes, planes)
    x = jax.random.normal(k_x, (N, inplanes, H, W), jnp.float32)

    out = bottleneck_forward(x, kparams)
    jax.block_until_ready(out)

    ref = bottleneck_reference(x, raw)
    assert out.shape == (N, planes * 4, H, W), out.shape
    assert jnp.allclose(out, ref, atol=5e-2, rtol=5e-2), float(
        jnp.max(jnp.abs(out - ref)))
    print("KERNEL_OK")
</pallas_src>

<mosaic_0001>
module attributes {stable_mosaic.version = 11 : i64} {
  func.func @_bottleneck_kernel(%arg0: i32, %arg1: memref<1x64x256xf32, #tpu.memory_space<vmem>>, %arg2: memref<16x64xbf16, #tpu.memory_space<vmem>>, %arg3: memref<16x1xf32, #tpu.memory_space<vmem>>, %arg4: memref<16x144xbf16, #tpu.memory_space<vmem>>, %arg5: memref<16x1xf32, #tpu.memory_space<vmem>>, %arg6: memref<64x16xbf16, #tpu.memory_space<vmem>>, %arg7: memref<64x1xf32, #tpu.memory_space<vmem>>, %arg8: memref<1x64x256xf32, #tpu.memory_space<vmem>>) attributes {dimension_semantics = [#tpu.dimension_semantics<parallel>], iteration_bounds = array<i64: 2>, scalar_prefetch = 0 : i64, scratch_operands = 0 : i64, tpu.core_type = #tpu.core_type<tc>, window_params = [{transform_indices = @transform_0, window_bounds = array<i64: 1, 64, 256>}, {pipeline_mode = #tpu.pipeline_mode<synchronous>, transform_indices = @transform_1, window_bounds = array<i64: 16, 64>}, {pipeline_mode = #tpu.pipeline_mode<synchronous>, transform_indices = @transform_2, window_bounds = array<i64: 16, 1>}, {pipeline_mode = #tpu.pipeline_mode<synchronous>, transform_indices = @transform_3, window_bounds = array<i64: 16, 144>}, {pipeline_mode = #tpu.pipeline_mode<synchronous>, transform_indices = @transform_4, window_bounds = array<i64: 16, 1>}, {pipeline_mode = #tpu.pipeline_mode<synchronous>, transform_indices = @transform_5, window_bounds = array<i64: 64, 16>}, {pipeline_mode = #tpu.pipeline_mode<synchronous>, transform_indices = @transform_6, window_bounds = array<i64: 64, 1>}, {transform_indices = @transform_7, window_bounds = array<i64: 1, 64, 256>}]} {
    %c0 = arith.constant 0 : index
    %c0_0 = arith.constant 0 : index
    %c0_1 = arith.constant 0 : index
    %0 = vector.load %arg1[%c0, %c0_0, %c0_1] : memref<1x64x256xf32, #tpu.memory_space<vmem>>, vector<1x64x256xf32>
    %1 = vector.shape_cast %0 : vector<1x64x256xf32> to vector<64x256xf32>
    %2 = arith.truncf %1 : vector<64x256xf32> to vector<64x256xbf16>
    %c0_2 = arith.constant 0 : index
    %c0_3 = arith.constant 0 : index
    %3 = vector.load %arg2[%c0_2, %c0_3] : memref<16x64xbf16, #tpu.memory_space<vmem>>, vector<16x64xbf16>
    %cst = arith.constant dense<0.000000e+00> : vector<16x256xf32>
    %4 = tpu.matmul %3, %2, %cst {dimension_numbers = #tpu.dot_dimension_numbers<[1], [0], [0], [1], [0, 0, 1, 1], [], []>} : vector<16x64xbf16>, vector<64x256xbf16>, vector<16x256xf32> -> vector<16x256xf32>
    %c0_4 = arith.constant 0 : index
    %c0_5 = arith.constant 0 : index
    %5 = vector.load %arg3[%c0_4, %c0_5] : memref<16x1xf32, #tpu.memory_space<vmem>>, vector<16x1xf32>
    %6 = vector.broadcast %5 : vector<16x1xf32> to vector<16x256xf32>
    %7 = arith.addf %4, %6 : vector<16x256xf32>
    %cst_6 = arith.constant 0.000000e+00 : f32
    %8 = vector.broadcast %cst_6 : f32 to vector<16x256xf32>
    %9 = arith.maximumf %7, %8 : vector<16x256xf32>
    %10 = arith.truncf %9 : vector<16x256xf32> to vector<16x256xbf16>
    %11 = tpu.iota {dimensions = array<i32: 1>} : vector<16x256xi32>
    %c16_i32 = arith.constant 16 : i32
    %c0_i32 = arith.constant 0 : i32
    %12 = arith.cmpi eq, %c16_i32, %c0_i32 : i32
    %c1_i32 = arith.constant 1 : i32
    %13 = arith.select %12, %c1_i32, %c16_i32 : i32
    %14 = vector.broadcast %13 : i32 to vector<16x256xi32>
    %15 = arith.remsi %11, %14 : vector<16x256xi32>
    %c0_i32_7 = arith.constant 0 : i32
    %16 = vector.broadcast %c0_i32_7 : i32 to vector<16x256xi32>
    %17 = arith.cmpi ne, %15, %16 : vector<16x256xi32>
    %c0_i32_8 = arith.constant 0 : i32
    %18 = vector.broadcast %c0_i32_8 : i32 to vector<16x256xi32>
    %19 = arith.cmpi slt, %15, %18 : vector<16x256xi32>
    %c0_i32_9 = arith.constant 0 : i32
    %20 = arith.cmpi slt, %13, %c0_i32_9 : i32
    %21 = vector.broadcast %20 : i1 to vector<16x256xi1>
    %22 = vector.broadcast %21 : vector<16x256xi1> to vector<16x256xi1>
    %23 = arith.xori %19, %22 : vector<16x256xi1>
    %24 = arith.andi %23, %17 : vector<16x256xi1>
    %25 = vector.broadcast %13 : i32 to vector<16x256xi32>
    %26 = arith.addi %15, %25 : vector<16x256xi32>
    %27 = arith.select %24, %26, %15 : vector<16x256xi1>, vector<16x256xi32>
    %cst_10 = arith.constant 0.000000e+00 : bf16
    %28 = vector.broadcast %cst_10 : bf16 to vector<16x17xbf16>
    %29 = vector.extract_strided_slice %10 {offsets = [0, 0], sizes = [16, 239], strides = [1, 1]} : vector<16x256xbf16> to vector<16x239xbf16>
    %30 = tpu.concatenate %28, %29 in 1 : vector<16x17xbf16>, vector<16x239xbf16> -> vector<16x256xbf16>
    %c-1_i32 = arith.constant -1 : i32
    %31 = vector.broadcast %c-1_i32 : i32 to vector<16x256xi32>
    %32 = arith.addi %27, %31 : vector<16x256xi32>
    %c0_i32_11 = arith.constant 0 : i32
    %33 = vector.broadcast %c0_i32_11 : i32 to vector<16x256xi32>
    %34 = arith.cmpi sge, %32, %33 : vector<16x256xi32>
    %c-1_i32_12 = arith.constant -1 : i32
    %35 = vector.broadcast %c-1_i32_12 : i32 to vector<16x256xi32>
    %36 = arith.addi %27, %35 : vector<16x256xi32>
    %c16_i32_13 = arith.constant 16 : i32
    %37 = vector.broadcast %c16_i32_13 : i32 to vector<16x256xi32>
    %38 = arith.cmpi slt, %36, %37 : vector<16x256xi32>
    %39 = arith.andi %34, %38 : vector<16x256xi1>
    %cst_14 = arith.constant 0.000000e+00 : bf16
    %40 = vector.broadcast %cst_14 : bf16 to vector<16x256xbf16>
    %41 = arith.select %39, %30, %40 : vector<16x256xi1>, vector<16x256xbf16>
    %cst_15 = arith.constant 0.000000e+00 : bf16
    %42 = vector.broadcast %cst_15 : bf16 to vector<16x16xbf16>
    %43 = vector.extract_strided_slice %10 {offsets = [0, 0], sizes = [16, 240], strides = [1, 1]} : vector<16x256xbf16> to vector<16x240xbf16>
    %44 = tpu.concatenate %42, %43 in 1 : vector<16x16xbf16>, vector<16x240xbf16> -> vector<16x256xbf16>
    %cst_16 = arith.constant 0.000000e+00 : bf16
    %45 = vector.broadcast %cst_16 : bf16 to vector<16x15xbf16>
    %46 = vector.extract_strided_slice %10 {offsets = [0, 0], sizes = [16, 241], strides = [1, 1]} : vector<16x256xbf16> to vector<16x241xbf16>
    %47 = tpu.concatenate %45, %46 in 1 : vector<16x15xbf16>, vector<16x241xbf16> -> vector<16x256xbf16>
    %c1_i32_17 = arith.constant 1 : i32
    %48 = vector.broadcast %c1_i32_17 : i32 to vector<16x256xi32>
    %49 = arith.addi %27, %48 : vector<16x256xi32>
    %c0_i32_18 = arith.constant 0 : i32
    %50 = vector.broadcast %c0_i32_18 : i32 to vector<16x256xi32>
    %51 = arith.cmpi sge, %49, %50 : vector<16x256xi32>
    %c1_i32_19 = arith.constant 1 : i32
    %52 = vector.broadcast %c1_i32_19 : i32 to vector<16x256xi32>
    %53 = arith.addi %27, %52 : vector<16x256xi32>
    %c16_i32_20 = arith.constant 16 : i32
    %54 = vector.broadcast %c16_i32_20 : i32 to vector<16x256xi32>
    %55 = arith.cmpi slt, %53, %54 : vector<16x256xi32>
    %56 = arith.andi %51, %55 : vector<16x256xi1>
    %cst_21 = arith.constant 0.000000e+00 : bf16
    %57 = vector.broadcast %cst_21 : bf16 to vector<16x256xbf16>
    %58 = arith.select %56, %47, %57 : vector<16x256xi1>, vector<16x256xbf16>
    %cst_22 = arith.constant 0.000000e+00 : bf16
    %59 = vector.broadcast %cst_22 : bf16 to vector<16x1xbf16>
    %60 = vector.extract_strided_slice %10 {offsets = [0, 0], sizes = [16, 255], strides = [1, 1]} : vector<16x256xbf16> to vector<16x255xbf16>
    %61 = tpu.concatenate %59, %60 in 1 : vector<16x1xbf16>, vector<16x255xbf16> -> vector<16x256xbf16>
    %c-1_i32_23 = arith.constant -1 : i32
    %62 = vector.broadcast %c-1_i32_23 : i32 to vector<16x256xi32>
    %63 = arith.addi %27, %62 : vector<16x256xi32>
    %c0_i32_24 = arith.constant 0 : i32
    %64 = vector.broadcast %c0_i32_24 : i32 to vector<16x256xi32>
    %65 = arith.cmpi sge, %63, %64 : vector<16x256xi32>
    %c-1_i32_25 = arith.constant -1 : i32
    %66 = vector.broadcast %c-1_i32_25 : i32 to vector<16x256xi32>
    %67 = arith.addi %27, %66 : vector<16x256xi32>
    %c16_i32_26 = arith.constant 16 : i32
    %68 = vector.broadcast %c16_i32_26 : i32 to vector<16x256xi32>
    %69 = arith.cmpi slt, %67, %68 : vector<16x256xi32>
    %70 = arith.andi %65, %69 : vector<16x256xi1>
    %cst_27 = arith.constant 0.000000e+00 : bf16
    %71 = vector.broadcast %cst_27 : bf16 to vector<16x256xbf16>
    %72 = arith.select %70, %61, %71 : vector<16x256xi1>, vector<16x256xbf16>
    %73 = vector.extract_strided_slice %10 {offsets = [0, 1], sizes = [16, 255], strides = [1, 1]} : vector<16x256xbf16> to vector<16x255xbf16>
    %cst_28 = arith.constant 0.000000e+00 : bf16
    %74 = vector.broadcast %cst_28 : bf16 to vector<16x1xbf16>
    %75 = tpu.concatenate %73, %74 in 1 : vector<16x255xbf16>, vector<16x1xbf16> -> vector<16x256xbf16>
    %c1_i32_29 = arith.constant 1 : i32
    %76 = vector.broadcast %c1_i32_29 : i32 to vector<16x256xi32>
    %77 = arith.addi %27, %76 : vector<16x256xi32>
    %c0_i32_30 = arith.constant 0 : i32
    %78 = vector.broadcast %c0_i32_30 : i32 to vector<16x256xi32>
    %79 = arith.cmpi sge, %77, %78 : vector<16x256xi32>
    %c1_i32_31 = arith.constant 1 : i32
    %80 = vector.broadcast %c1_i32_31 : i32 to vector<16x256xi32>
    %81 = arith.addi %27, %80 : vector<16x256xi32>
    %c16_i32_32 = arith.constant 16 : i32
    %82 = vector.broadcast %c16_i32_32 : i32 to vector<16x256xi32>
    %83 = arith.cmpi slt, %81, %82 : vector<16x256xi32>
    %84 = arith.andi %79, %83 : vector<16x256xi1>
    %cst_33 = arith.constant 0.000000e+00 : bf16
    %85 = vector.broadcast %cst_33 : bf16 to vector<16x256xbf16>
    %86 = arith.select %84, %75, %85 : vector<16x256xi1>, vector<16x256xbf16>
    %87 = vector.extract_strided_slice %10 {offsets = [0, 15], sizes = [16, 241], strides = [1, 1]} : vector<16x256xbf16> to vector<16x241xbf16>
    %cst_34 = arith.constant 0.000000e+00 : bf16
    %88 = vector.broadcast %cst_34 : bf16 to vector<16x15xbf16>
    %89 = tpu.concatenate %87, %88 in 1 : vector<16x241xbf16>, vector<16x15xbf16> -> vector<16x256xbf16>
    %c-1_i32_35 = arith.constant -1 : i32
    %90 = vector.broadcast %c-1_i32_35 : i32 to vector<16x256xi32>
    %91 = arith.addi %27, %90 : vector<16x256xi32>
    %c0_i32_36 = arith.constant 0 : i32
    %92 = vector.broadcast %c0_i32_36 : i32 to vector<16x256xi32>
    %93 = arith.cmpi sge, %91, %92 : vector<16x256xi32>
    %c-1_i32_37 = arith.constant -1 : i32
    %94 = vector.broadcast %c-1_i32_37 : i32 to vector<16x256xi32>
    %95 = arith.addi %27, %94 : vector<16x256xi32>
    %c16_i32_38 = arith.constant 16 : i32
    %96 = vector.broadcast %c16_i32_38 : i32 to vector<16x256xi32>
    %97 = arith.cmpi slt, %95, %96 : vector<16x256xi32>
    %98 = arith.andi %93, %97 : vector<16x256xi1>
    %cst_39 = arith.constant 0.000000e+00 : bf16
    %99 = vector.broadcast %cst_39 : bf16 to vector<16x256xbf16>
    %100 = arith.select %98, %89, %99 : vector<16x256xi1>, vector<16x256xbf16>
    %101 = vector.extract_strided_slice %10 {offsets = [0, 16], sizes = [16, 240], strides = [1, 1]} : vector<16x256xbf16> to vector<16x240xbf16>
    %cst_40 = arith.constant 0.000000e+00 : bf16
    %102 = vector.broadcast %cst_40 : bf16 to vector<16x16xbf16>
    %103 = tpu.concatenate %101, %102 in 1 : vector<16x240xbf16>, vector<16x16xbf16> -> vector<16x256xbf16>
    %104 = vector.extract_strided_slice %10 {offsets = [0, 17], sizes = [16, 239], strides = [1, 1]} : vector<16x256xbf16> to vector<16x239xbf16>
    %cst_41 = arith.constant 0.000000e+00 : bf16
    %105 = vector.broadcast %cst_41 : bf16 to vector<16x17xbf16>
    %106 = tpu.concatenate %104, %105 in 1 : vector<16x239xbf16>, vector<16x17xbf16> -> vector<16x256xbf16>
    %c1_i32_42 = arith.constant 1 : i32
    %107 = vector.broadcast %c1_i32_42 : i32 to vector<16x256xi32>
    %108 = arith.addi %27, %107 : vector<16x256xi32>
    %c0_i32_43 = arith.constant 0 : i32
    %109 = vector.broadcast %c0_i32_43 : i32 to vector<16x256xi32>
    %110 = arith.cmpi sge, %108, %109 : vector<16x256xi32>
    %c1_i32_44 = arith.constant 1 : i32
    %111 = vector.broadcast %c1_i32_44 : i32 to vector<16x256xi32>
    %112 = arith.addi %27, %111 : vector<16x256xi32>
    %c16_i32_45 = arith.constant 16 : i32
    %113 = vector.broadcast %c16_i32_45 : i32 to vector<16x256xi32>
    %114 = arith.cmpi slt, %112, %113 : vector<16x256xi32>
    %115 = arith.andi %110, %114 : vector<16x256xi1>
    %cst_46 = arith.constant 0.000000e+00 : bf16
    %116 = vector.broadcast %cst_46 : bf16 to vector<16x256xbf16>
    %117 = arith.select %115, %106, %116 : vector<16x256xi1>, vector<16x256xbf16>
    %118 = tpu.concatenate %41, %44, %58, %72, %10, %86, %100, %103, %117 in 0 : vector<16x256xbf16>, vector<16x256xbf16>, vector<16x256xbf16>, vector<16x256xbf16>, vector<16x256xbf16>, vector<16x256xbf16>, vector<16x256xbf16>, vector<16x256xbf16>, vector<16x256xbf16> -> vector<144x256xbf16>
    %c0_47 = arith.constant 0 : index
    %c0_48 = arith.constant 0 : index
    %119 = vector.load %arg4[%c0_47, %c0_48] : memref<16x144xbf16, #tpu.memory_space<vmem>>, vector<16x144xbf16>
    %cst_49 = arith.constant dense<0.000000e+00> : vector<16x256xf32>
    %120 = tpu.matmul %119, %118, %cst_49 {dimension_numbers = #tpu.dot_dimension_numbers<[1], [0], [0], [1], [0, 0, 1, 1], [], []>} : vector<16x144xbf16>, vector<144x256xbf16>, vector<16x256xf32> -> vector<16x256xf32>
    %c0_50 = arith.constant 0 : index
    %c0_51 = arith.constant 0 : index
    %121 = vector.load %arg5[%c0_50, %c0_51] : memref<16x1xf32, #tpu.memory_space<vmem>>, vector<16x1xf32>
    %122 = vector.broadcast %121 : vector<16x1xf32> to vector<16x256xf32>
    %123 = arith.addf %120, %122 : vector<16x256xf32>
    %cst_52 = arith.constant 0.000000e+00 : f32
    %124 = vector.broadcast %cst_52 : f32 to vector<16x256xf32>
    %125 = arith.maximumf %123, %124 : vector<16x256xf32>
    %126 = arith.truncf %125 : vector<16x256xf32> to vector<16x256xbf16>
    %c0_53 = arith.constant 0 : index
    %c0_54 = arith.constant 0 : index
    %127 = vector.load %arg6[%c0_53, %c0_54] : memref<64x16xbf16, #tpu.memory_space<vmem>>, vector<64x16xbf16>
    %cst_55 = arith.constant dense<0.000000e+00> : vector<64x256xf32>
    %128 = tpu.matmul %127, %126, %cst_55 {dimension_numbers = #tpu.dot_dimension_numbers<[1], [0], [0], [1], [0, 0, 1, 1], [], []>} : vector<64x16xbf16>, vector<16x256xbf16>, vector<64x256xf32> -> vector<64x256xf32>
    %c0_56 = arith.constant 0 : index
    %c0_57 = arith.constant 0 : index
    %129 = vector.load %arg7[%c0_56, %c0_57] : memref<64x1xf32, #tpu.memory_space<vmem>>, vector<64x1xf32>
    %130 = vector.broadcast %129 : vector<64x1xf32> to vector<64x256xf32>
    %131 = arith.addf %128, %130 : vector<64x256xf32>
    %132 = arith.addf %131, %1 : vector<64x256xf32>
    %cst_58 = arith.constant 0.000000e+00 : f32
    %133 = vector.broadcast %cst_58 : f32 to vector<64x256xf32>
    %134 = arith.maximumf %132, %133 : vector<64x256xf32>
    %c0_59 = arith.constant 0 : index
    %c0_60 = arith.constant 0 : index
    %c0_61 = arith.constant 0 : index
    %135 = vector.load %arg8[%c0_59, %c0_60, %c0_61] : memref<1x64x256xf32, #tpu.memory_space<vmem>>, vector<1x64x256xf32>
    %136 = vector.shape_cast %135 : vector<1x64x256xf32> to vector<64x256xf32>
    %137 = vector.shape_cast %134 : vector<64x256xf32> to vector<1x64x256xf32>
    tpu.vector_store %arg8[%c0_59, %c0_60, %c0_61], %137 {strides = array<i32>} : memref<1x64x256xf32, #tpu.memory_space<vmem>>, vector<1x64x256xf32>,
    return
  }
  func.func @transform_0(%arg0: i32) -> (i32, i32, i32) {
    %c0_i32 = arith.constant 0 : i32
    %c0_i32_0 = arith.constant 0 : i32
    %c0_i32_1 = arith.constant 0 : i32
    return %arg0, %c0_i32, %c0_i32_0 : i32, i32, i32
  }
  func.func @transform_1(%arg0: i32) -> (i32, i32) {
    %c0_i32 = arith.constant 0 : i32
    %c0_i32_0 = arith.constant 0 : i32
    %c0_i32_1 = arith.constant 0 : i32
    return %c0_i32, %c0_i32_0 : i32, i32
  }
  func.func @transform_2(%arg0: i32) -> (i32, i32) {
    %c0_i32 = arith.constant 0 : i32
    %c0_i32_0 = arith.constant 0 : i32
    %c0_i32_1 = arith.constant 0 : i32
    return %c0_i32, %c0_i32_0 : i32, i32
  }
  func.func @transform_3(%arg0: i32) -> (i32, i32) {
    %c0_i32 = arith.constant 0 : i32
    %c0_i32_0 = arith.constant 0 : i32
    %c0_i32_1 = arith.constant 0 : i32
    return %c0_i32, %c0_i32_0 : i32, i32
  }
  func.func @transform_4(%arg0: i32) -> (i32, i32) {
    %c0_i32 = arith.constant 0 : i32
    %c0_i32_0 = arith.constant 0 : i32
    %c0_i32_1 = arith.constant 0 : i32
    return %c0_i32, %c0_i32_0 : i32, i32
  }
  func.func @transform_5(%arg0: i32) -> (i32, i32) {
    %c0_i32 = arith.constant 0 : i32
    %c0_i32_0 = arith.constant 0 : i32
    %c0_i32_1 = arith.constant 0 : i32
    return %c0_i32, %c0_i32_0 : i32, i32
  }
  func.func @transform_6(%arg0: i32) -> (i32, i32) {
    %c0_i32 = arith.constant 0 : i32
    %c0_i32_0 = arith.constant 0 : i32
    %c0_i32_1 = arith.constant 0 : i32
    return %c0_i32, %c0_i32_0 : i32, i32
  }
  func.func @transform_7(%arg0: i32) -> (i32, i32, i32) {
    %c0_i32 = arith.constant 0 : i32
    %c0_i32_0 = arith.constant 0 : i32
    %c0_i32_1 = arith.constant 0 : i32
    return %arg0, %c0_i32, %c0_i32_0 : i32, i32, i32
  }
}

</mosaic_0001>

<bundles_post_ra>
// kernel: bottleneck_forward.1
= control target key start
LH: loop header
LB: loop body
LE: loop exit
PB: predicated region body
PF: predicated region fallthrough
CT: control target
= control target key end

     0   :  { %s1006_s24 = smov 0   ;;  %s1219_s0 = inlined_call_operand.vmem [shape: f32[2,64,256], index: 0, kind: input, shape index: {}]   ;;  %s1220_s1 = inlined_call_operand.vmem [shape: bf16[16,64], index: 1, kind: input, shape index: {}]   ;;  %s1221_s2 = inlined_call_operand.vmem [shape: f32[16,1], index: 2, kind: input, shape index: {}]   ;;  %s1222_s3 = inlined_call_operand.vmem [shape: bf16[16,144], index: 3, kind: input, shape index: {}]   ;;  %s1223_s4 = inlined_call_operand.vmem [shape: f32[16,1], index: 4, kind: input, shape index: {}]   ;;  %s1224_s5 = inlined_call_operand.vmem [shape: bf16[64,16], index: 5, kind: input, shape index: {}]   ;;  %s1225_s6 = inlined_call_operand.vmem [shape: f32[64,1], index: 6, kind: input, shape index: {}]   ;;  %s1226_s7 = inlined_call_operand.vmem [shape: f32[2,64,256], index: 7, kind: output, shape index: {}]  }
   0x1 LB: > { %s887_s25 = sadd.s32 4294967295, %s955_s24   ;;  %p891_p0 = scmp.ge.s32.totalorder %s955_s24, 1  ;;  %s955_s24 = sphi %s1006_s24, %s17_s24  }
   0x2   : > { %p237_p1 = scmp.lt.s32.totalorder %s955_s24, 3 }
   0x4   : > { %p238_p2 = pnand %p891_p0, %p237_p1 }
   0x5   : > { %p269_p3 = scmp.lt.s32.totalorder (!%p238_p2), %s887_s25, 1  ;;  %v957_v0 = vmov (!%p238_p2), 0   ;;  %v308_v1 = vld [vmem:[%s1221_s2] sm:$0xff] (!%p238_p2)  ;;  %v309_v2 = vld [vmem:[%s1221_s2 + $0x8] sm:$0xff] (!%p238_p2)  ;;  %vm325_vm0 = vcmask (!%p238_p2), 523264   ;;  %s958_s13 = smov (!%p238_p2), 16   ;;  %v378_v55 = vlaneseq (!%p238_p2) }
   0x6   : > { %241 = sbr.rel (%p238_p2) target bundleno = 882 (0x372), region = 48  ;;  %361 = vmatprep.mubr.bf16.mxu0 (!%p238_p2), %v957_v0  ;;  %939 = vset.pattern.permute.xlu0 (!%p238_p2), %v957_v0  ;;  %v941_v27 = vld [vmem:[%s1220_s1] sm:$0xff] (!%p238_p2)   ;;  %s959_s14 = smov (!%p238_p2), 17   ;;  %vm445_vm1 = vcmask (!%p238_p2), 130048   ;;  %v633_v47 = vld [vmem:[%s1225_s6 + $0x10] sm:$0xff] (!%p238_p2)  ;;  %v551_v50 = vld [vmem:[%s1223_s4 + $0x8] sm:$0xff] (!%p238_p2) }
   0x7   : > { %312 = vperm.xlu0 (!%p238_p2), %939, %v308_v1   ;;  %940 = vset.pattern.permute.xlu1 (!%p238_p2), %v957_v0  ;;  %s960_s15 = smov (!%p238_p2), 15   ;;  %s961_s16 = smov (!%p238_p2), 1   ;;  %v550_v44 = vld [vmem:[%s1223_s4] sm:$0xff] (!%p238_p2)  ;;  %v637_v49 = vld [vmem:[%s1225_s6 + $0x30] sm:$0xff] (!%p238_p2)  ;;  %v632_v51 = vld [vmem:[%s1225_s6 + $0x8] sm:$0xff] (!%p238_p2)  ;;  %v379_v56 = vand.u32 (!%p238_p2), 127, %v378_v55 }
   0x8   : > { %s962_s17 = smov (!%p238_p2), 127   ;;  %s963_s18 = smov (!%p238_p2), 113   ;;  %v944_v45 = vld [vmem:[%s1222_s3 + $0x4] ss:$8 sps:$4 sm:$0xff] (!%p238_p2)   ;;  %v634_v52 = vld [vmem:[%s1225_s6 + $0x18] sm:$0xff] (!%p238_p2)  ;;  %v430_v62 = vshrl.u32 (!%p238_p2), %v378_v55, 7  ;;  %vm901_vm12 = vmneg (!%p238_p2), %vm445_vm1 }
   0x9   : > { %s964_s19 = smov (!%p238_p2), 112   ;;  %s965_s20 = smov (!%p238_p2), 111   ;;  %909 = vmatprep.mubr.msk.bf16.mxu1 (!%p238_p2), %vm445_vm1, %v944_v45  ;;  %v631_v46 = vld [vmem:[%s1225_s6] sm:$0xff] (!%p238_p2)  ;;  %v636_v53 = vld [vmem:[%s1225_s6 + $0x28] sm:$0xff] (!%p238_p2)  ;;  %v638_v54 = vld [vmem:[%s1225_s6 + $0x38] sm:$0xff] (!%p238_p2)  ;;  %v380_v57 = vadd.s32 (!%p238_p2), 128, %v379_v56 }
   0xa   : > { %v635_v48 = vld [vmem:[%s1225_s6 + $0x20] sm:$0xff] (!%p238_p2)  ;;  %v385_v58 = vand.u32 (!%p238_p2), 15, %v379_v56  ;;  %vm411_vm7 = vcmask (!%p238_p2), 138240   ;;  %vm456_vm11 = vcmask (!%p238_p2), 121856   ;;  %vm489_vm15 = vcmask (!%p238_p2), 7168  }
   0xb   : > { %317 = vperm.xlu0 (!%p238_p2), %939, %v309_v2   ;;  %v392_v59 = vand.u32 (!%p238_p2), 15, %v380_v57  ;;  %v435_v2 = vsub.s32 (!%p238_p2), 4, %v430_v62 }
   0xc   : > { %v419_v60 = vadd.s32 (!%p238_p2), 4294967295, %v385_v58  ;;  %v463_v63 = vadd.s32 (!%p238_p2), 1, %v385_v58 }
   0xd   : > { %s1228_s25 = smov (!%p269_p3, %s887_s25), 1  ;;  %v420_v61 = vadd.s32 4294967295, %v392_v59  ;;  %v464_v1 = vadd.s32 1, %v392_v59 }
   0xe   : > { %s920_s30 = sshll.u32 %s1228_s25, 7  ;;  %vm421_vm2 = vcmp.ge.s32.totalorder %v419_v60, 0  ;;  %vm467_vm5 = vcmp.lt.s32.totalorder %v463_v63, 16 }
   0xf   : > { %s273_s10 = scalar_lea.vmem %s1219_s0, %s920_s30  ;;  %vm422_vm3 = vcmp.ge.s32.totalorder %v420_v61, 0  ;;  %vm468_vm6 = vcmp.lt.s32.totalorder %v464_v1, 16 }
  0x10   : > { %v1031_v3 = vld [vmem:[%s273_s10 + $0x8] sm:$0xff]  ;;  %v1033_v4 = vld [vmem:[%s273_s10 + $0x18] sm:$0xff]  ;;  %v1035_v5 = vld [vmem:[%s273_s10] sm:$0xff] }
  0x11   : > { %v299_v6 = vpack.c.bf16 %v1033_v4, %v1031_v3  ;;  %v1039_v7 = vld [vmem:[%s273_s10 + $0x10] sm:$0xff]  ;;  %v1041_v8 = vld [vmem:[%s273_s10 + $0x28] sm:$0xff]  ;;  %v1043_v9 = vld [vmem:[%s273_s10 + $0x38] sm:$0xff] }
  0x12   : > { %v298_v10 = vpack.c.bf16 %v1039_v7, %v1035_v5  ;;  %v301_v11 = vpack.c.bf16 %v1043_v9, %v1041_v8  ;;  %v1049_v12 = vld [vmem:[%s273_s10 + $0x20] sm:$0xff]  ;;  %v1051_v13 = vld [vmem:[%s273_s10 + $0x30] sm:$0xff]  ;;  %v1053_v14 = vld [vmem:[%s273_s10 + $0x48] sm:$0xff] }
  0x13   : > { %329 = vmatprep.subr.bf16.mxu0 %v299_v6  ;;  %v1055_v15 = vld [vmem:[%s273_s10 + $0x58] sm:$0xff]  ;;  %v300_v16 = vpack.c.bf16 %v1051_v13, %v1049_v12  ;;  %v1061_v18 = vld [vmem:[%s273_s10 + $0x40] sm:$0xff]  ;;  %v1063_v19 = vld [vmem:[%s273_s10 + $0x50] sm:$0xff]  ;;  %v431_v6 = vsub.s32 0, %v430_v62 }
  0x14   : > { %330 = vmatpush1.bf16.msra.mxu0 %v298_v10  ;;  %v303_v17 = vpack.c.bf16 %v1055_v15, %v1053_v14  ;;  %v1065_v20 = vld [vmem:[%s273_s10 + $0x68] sm:$0xff]  ;;  %v1067_v21 = vld [vmem:[%s273_s10 + $0x78] sm:$0xff]  ;;  %v302_v22 = vpack.c.bf16 %v1063_v19, %v1061_v18  ;;  %v1073_v24 = vld [vmem:[%s273_s10 + $0x60] sm:$0xff] }
  0x15   : > { %331 = vmatprep.subr.bf16.mxu0 %v301_v11  ;;  %v305_v23 = vpack.c.bf16 %v1067_v21, %v1065_v20  ;;  %v1075_v25 = vld [vmem:[%s273_s10 + $0x70] sm:$0xff]  ;;  %vm427_vm4 = vmpackc.low %vm422_vm3, %vm421_vm2  ;;  %vm515_vm2 = vcmask 924672   ;;  %vm528_vm3 = vcmask 916480   ;;  %v942_v62 = vld [vmem:[%s1222_s3] ss:$8 sps:$4 sm:$0xff]  }
  0x16   : > { %v304_v26 = vpack.c.bf16 %v1075_v25, %v1073_v24  ;;  %v428_v10 = vsel %vm427_vm4, 65537, %v957_v0  ;;  %vm471_vm8 = vmpackc.low %vm468_vm6, %vm467_vm5  ;;  %vm539_vm4 = vcmask 908288  }
  0x17   : > { %v436_v11 = vrot.slane %v428_v10, %v435_v2 }
  0x18   : > { %332 = vmatpush1.bf16.msra.mxu0 %v300_v16  ;;  %v432_v16 = vrot.slane %v428_v10, %v431_v6 }
  0x19   : > { %333 = vmatprep.subr.bf16.mxu0 %v303_v17  ;;  %vm438_vm9 = vcmp.ne.s16.totalorder %v436_v11, 0 }
  0x1a   : > { %vm437_vm10 = vcmp.ne.s16.totalorder %v432_v16, 0 }
  0x1c   : > { %334 = vmatpush1.bf16.msra.mxu0 %v302_v22 }
  0x1d   : > { %335 = vmatprep.subr.bf16.mxu0 %v305_v23 }
  0x20   : > { %336 = vmatpush1.bf16.msra.mxu0 %v304_v26 }
  0x23   : > { %897 = vmatmul.mubr.msk.bf16.vlgmr.msra.gmra.mrb[0].mxu0 %vm325_vm0, %v941_v27  ;;  %vm502_vm0 = vcmask 1039360  }
  0x24   : > { %743 = vmatprep.mubr.bf16.mxu0 %v957_v0 }
  0x86   : > { %v313_v28 = vpop.permute.xlu0 %312 }
  0x8a   : > { %v318_v32 = vpop.permute.xlu0 %317 }
  0xf6   : > { %v363_v29 = vpop.f32.mrb[0].mxu0 }
  0xf7   : > { %v364_v30 = vadd.f32 %v363_v29, %v313_v28  ;;  %v365_v31 = vpop.f32.mrb[1].mxu0 }
  0xf8   : > { %v366_v33 = vadd.f32 %v365_v31, %v313_v28  ;;  %v367_v34 = vpop.f32.mrb[2].mxu0  ;;  %v472_v28 = vsel %vm471_vm8, 65537, %v957_v0 }
  0xf9   : > { %v368_v35 = vadd.f32 %v367_v34, %v318_v32  ;;  %v369_v36 = vpop.f32.mrb[3].mxu0  ;;  %v372_v38 = vmax.f32 %v364_v30, 0.0  ;;  %v480_v31 = vrot.slane %v472_v28, %v435_v2 }
  0xfa   : > { %v370_v37 = vadd.f32 %v369_v36, %v318_v32  ;;  %v373_v40 = vmax.f32 %v366_v33, 0.0  ;;  %v476_v32 = vrot.slane %v472_v28, %v431_v6 }
  0xfb   : > { %v374_v39 = vmax.f32 %v368_v35, 0.0  ;;  %vm482_vm13 = vcmp.ne.s16.totalorder %v480_v31, 0 }
  0xfc   : > { %v375_v41 = vmax.f32 %v370_v37, 0.0  ;;  %vm481_vm14 = vcmp.ne.s16.totalorder %v476_v32, 0  ;;  %v945_v32 = vld [vmem:[%s1224_s5] sm:$0xff]  }
  0xfd   : > { %v1083_v42 = vpack.c.bf16 %v374_v39, %v372_v38 }
  0xfe   : > { %v1085_v43 = vpack.c.bf16 %v375_v41, %v373_v40 }
  0xff   : > { %441 = vrot.lane.b32.xlu0 %v1083_v42, %s958_s13  ;;  %407 = vrot.lane.b32.xlu1 %v1083_v42, %s959_s14 }
 0x103   : > { %452 = vrot.lane.b32.xlu0 %v1083_v42, %s960_s15  ;;  %409 = vrot.lane.b32.xlu1 %v1085_v43, %s959_s14 }
 0x107   : > { %485 = vrot.lane.b32.xlu0 %v1083_v42, %s961_s16  ;;  %443 = vrot.lane.b32.xlu1 %v1085_v43, %s958_s13 }
 0x10b   : > { %498 = vrot.lane.b32.xlu0 %v1083_v42, %s962_s17  ;;  %454 = vrot.lane.b32.xlu1 %v1085_v43, %s960_s15  ;;  %s1183_s15 = scalar_lea.vmem %s1226_s7, %s920_s30 }
 0x10f   : > { %511 = vrot.lane.b32.xlu0 %v1083_v42, %s963_s18  ;;  %487 = vrot.lane.b32.xlu1 %v1085_v43, %s961_s16 }
 0x113   : > { %524 = vrot.lane.b32.xlu0 %v1083_v42, %s964_s19  ;;  %500 = vrot.lane.b32.xlu1 %v1085_v43, %s962_s17 }
 0x117   : > { %535 = vrot.lane.b32.xlu0 %v1083_v42, %s965_s20  ;;  %513 = vrot.lane.b32.xlu1 %v1085_v43, %s963_s18 }
 0x11b   : > { %554 = vperm.xlu0 %939, %v550_v44   ;;  %526 = vrot.lane.b32.xlu1 %v1085_v43, %s964_s19 }
 0x11f   : > { %641 = vperm.xlu0 %939, %v631_v46   ;;  %537 = vrot.lane.b32.xlu1 %v1085_v43, %s965_s20 }
 0x123   : > { %651 = vperm.xlu0 %939, %v633_v47   ;;  %559 = vperm.xlu1 %940, %v551_v50  }
 0x127   : > { %661 = vperm.xlu0 %939, %v635_v48   ;;  %646 = vperm.xlu1 %940, %v632_v51  }
 0x12b   : > { %671 = vperm.xlu0 %939, %v637_v49   ;;  %656 = vperm.xlu1 %940, %v634_v52  }
 0x12f   : > { %666 = vperm.xlu1 %940, %v636_v53  }
 0x133   : > { %676 = vperm.xlu1 %940, %v638_v54  }
 0x171   : > { %v442_v17 = vpop.permute.xlu0 %441  ;;  %v408_v22 = vpop.permute.xlu1 %407 }
 0x172   : > { %v417_v23 = vsel %vm411_vm7, 0, %v408_v22 }
 0x173   : > { %v439_v30 = vsel %vm437_vm10, %v417_v23, 0 }
 0x175   : > { %v453_v26 = vpop.permute.xlu0 %452  ;;  %v410_v27 = vpop.permute.xlu1 %409 }
 0x176   : > { %v412_v29 = vsel %vm411_vm7, %v408_v22, %v410_v27  ;;  %v461_v36 = vsel %vm456_vm11, 0, %v453_v26 }
 0x177   : > { %900 = vmatprep.subr.msk.bf16.mxu1 %vm438_vm9, %v412_v29  ;;  %v483_v39 = vsel %vm481_vm14, %v461_v36, 0 }
 0x178   : > { %575 = vmatpush1.bf16.msra.mxu1 %v439_v30 }
 0x179   : > { %v444_v33 = vpop.permute.xlu1 %443  ;;  %v486_v35 = vpop.permute.xlu0 %485 }
 0x17a   : > { %v446_v34 = vsel %vm445_vm1, %v442_v17, %v444_v33  ;;  %v494_v40 = vsel %vm489_vm15, 0, %v486_v35  ;;  %v946_v33 = vld [vmem:[%s1224_s5 + $0x8] sm:$0xff]  }
 0x17b   : > { %576 = vmatprep.subr.bf16.mxu1 %v446_v34  ;;  %v496_v46 = vsel %vm437_vm10, %v494_v40, 0  ;;  %v947_v34 = vld [vmem:[%s1224_s5 + $0x10] sm:$0xff]  }
 0x17c   : > { %902 = vmatpush1.bf16.msk.msra.mxu1 %vm901_vm12, %v442_v17 }
 0x17d   : > { %v455_v37 = vpop.permute.xlu1 %454  ;;  %v499_v41 = vpop.permute.xlu0 %498 }
 0x17e   : > { %v457_v38 = vsel %vm456_vm11, %v453_v26, %v455_v37 }
 0x17f   : > { %903 = vmatprep.subr.msk.bf16.mxu1 %vm482_vm13, %v457_v38 }
 0x180   : > { %579 = vmatpush1.bf16.msra.mxu1 %v483_v39 }
 0x181   : > { %v488_v44 = vpop.permute.xlu1 %487  ;;  %v512_v48 = vpop.permute.xlu0 %511 }
 0x182   : > { %v490_v45 = vsel %vm489_vm15, %v486_v35, %v488_v44  ;;  %v948_v35 = vld [vmem:[%s1224_s5 + $0x18] sm:$0xff]  }
 0x183   : > { %904 = vmatprep.subr.msk.bf16.mxu1 %vm438_vm9, %v490_v45 }
 0x184   : > { %581 = vmatpush1.bf16.msra.mxu1 %v496_v46 }
 0x185   : > { %582 = vmatprep.subr.bf16.mxu1 %v1085_v43  ;;  %v501_v47 = vpop.permute.xlu1 %500  ;;  %v525_v55 = vpop.permute.xlu0 %524 }
 0x186   : > { %v503_v49 = vsel %vm502_vm0, %v499_v41, %v501_v47  ;;  %v507_v50 = vsel %vm502_vm0, %v501_v47, 0 }
 0x187   : > { %v509_v52 = vsel %vm481_vm14, %v503_v49, 0 }
 0x188   : > { %583 = vmatpush1.bf16.msra.mxu1 %v1083_v42 }
 0x189   : > { %905 = vmatprep.subr.msk.bf16.mxu1 %vm482_vm13, %v507_v50  ;;  %v514_v51 = vpop.permute.xlu1 %513  ;;  %v536_v57 = vpop.permute.xlu0 %535 }
 0x18a   : > { %v516_v53 = vsel %vm515_vm2, %v512_v48, %v514_v51  ;;  %v520_v54 = vsel %vm515_vm2, %v514_v51, 0 }
 0x18b   : > { %v522_v56 = vsel %vm437_vm10, %v516_v53, 0 }
 0x18c   : > { %585 = vmatpush1.bf16.msra.mxu1 %v509_v52 }
 0x18d   : > { %906 = vmatprep.subr.msk.bf16.mxu1 %vm438_vm9, %v520_v54  ;;  %v527_v43 = vpop.permute.xlu1 %526 }
 0x18e   : > { %v529_v58 = vsel %vm528_vm3, %v525_v55, %v527_v43 }
 0x190   : > { %587 = vmatpush1.bf16.msra.mxu1 %v522_v56 }
 0x191   : > { %907 = vmatprep.subr.msk.bf16.mxu1 %vm528_vm3, %v527_v43  ;;  %v538_v42 = vpop.permute.xlu1 %537 }
 0x192   : > { %v540_v59 = vsel %vm539_vm4, %v536_v57, %v538_v42  ;;  %v544_v60 = vsel %vm539_vm4, %v538_v42, 0 }
 0x193   : > { %v546_v61 = vsel %vm481_vm14, %v540_v59, 0 }
 0x194   : > { %589 = vmatpush1.bf16.msra.mxu1 %v529_v58 }
 0x195   : > { %908 = vmatprep.subr.msk.bf16.mxu1 %vm482_vm13, %v544_v60 }
 0x198   : > { %591 = vmatpush1.bf16.msra.mxu1 %v546_v61 }
 0x19a   : > { %v555_v63 = vpop.permute.xlu0 %554 }
 0x19b   : > { %607 = vmatmul.mubr.bf16.vlgmr.msra.gmra.mrb[0].mxu1 %v942_v62 }
 0x19e   : > { %v642_v36 = vpop.permute.xlu0 %641 }
 0x1a2   : > { %v560_v10 = vpop.permute.xlu1 %559  ;;  %v652_v53 = vpop.permute.xlu0 %651 }
 0x1a6   : > { %v647_v40 = vpop.permute.xlu1 %646 }
 0x1aa   : > { %v657_v42 = vpop.permute.xlu1 %656 }
 0x26e   : > { %v608_v1 = vpop.f32.mrb[0].mxu1 }
 0x26f   : > { %v609_v2 = vadd.f32 %v608_v1, %v555_v63  ;;  %v610_v6 = vpop.f32.mrb[1].mxu1 }
 0x270   : > { %v611_v11 = vadd.f32 %v610_v6, %v555_v63  ;;  %v612_v16 = vpop.f32.mrb[2].mxu1  ;;  %v662_v6 = vpop.permute.xlu0 %661 }
 0x271   : > { %v613_v17 = vadd.f32 %v612_v16, %v560_v10  ;;  %v614_v22 = vpop.f32.mrb[3].mxu1  ;;  %v617_v26 = vmax.f32 %v609_v2, 0.0 }
 0x272   : > { %v615_v23 = vadd.f32 %v614_v22, %v560_v10  ;;  %v618_v28 = vmax.f32 %v611_v11, 0.0 }
 0x273   : > { %v619_v27 = vmax.f32 %v613_v17, 0.0  ;;  %v667_v17 = vpop.permute.xlu1 %666 }
 0x274   : > { %v620_v29 = vmax.f32 %v615_v23, 0.0 }
 0x275   : > { %v621_v30 = vpack.c.bf16 %v619_v27, %v617_v26 }
 0x276   : > { %v622_v31 = vpack.c.bf16 %v620_v29, %v618_v28 }
 0x278   : > { %711 = vmatprep.subr.bf16.mxu0 %v622_v31 }
 0x279   : > { %712 = vmatpush1.bf16.msra.mxu0 %v621_v30 }
 0x27c   : > { %914 = vmatmul.mubr.msk.bf16.vlgmr.msra.gmra.mrb[4].mxu0 %vm445_vm1, %v945_v32 }
 0x27d   : > { %753 = vmatprep.mubr.bf16.mxu0 %v957_v0 }
 0x284   : > { %915 = vmatmul.mubr.msk.bf16.gmra.mrb[8].mxu0 %vm445_vm1, %v946_v33  ;;  %v672_v33 = vpop.permute.xlu0 %671 }
 0x285   : > { %763 = vmatprep.mubr.bf16.mxu0 %v957_v0 }
 0x28c   : > { %916 = vmatmul.mubr.msk.bf16.gmra.mrb[12].mxu0 %vm445_vm1, %v947_v34 }
 0x28d   : > { %773 = vmatprep.mubr.bf16.mxu0 %v957_v0 }
 0x294   : > { %917 = vmatmul.mubr.msk.bf16.gmra.mrb[16].mxu0 %vm445_vm1, %v948_v35 }
 0x34f   : > { %v745_v37 = vpop.f32.mrb[4].mxu0 }
 0x350   : > { %v746_v38 = vadd.f32 %v745_v37, %v642_v36  ;;  %v747_v39 = vpop.f32.mrb[5].mxu0 }
 0x351   : > { %v748_v41 = vadd.f32 %v747_v39, %v642_v36  ;;  %v749_v44 = vpop.f32.mrb[6].mxu0 }
 0x352   : > { %v784_v45 = vadd.f32 %v746_v38, %v1035_v5  ;;  %v750_v46 = vadd.f32 %v749_v44, %v647_v40  ;;  %v751_v47 = vpop.f32.mrb[7].mxu0 }
 0x353   : > { %v785_v0 = vadd.f32 %v748_v41, %v1031_v3  ;;  %v752_v48 = vadd.f32 %v751_v47, %v647_v40 }
 0x354   : > { %v800_v49 = vmax.f32 %v784_v45, 0.0  ;;  %v786_v50 = vadd.f32 %v750_v46, %v1039_v7 }
 0x355   : > { %v801_v51 = vmax.f32 %v785_v0, 0.0  ;;  %v787_v5 = vadd.f32 %v752_v48, %v1033_v4 }
 0x356   : > { %816 = vst [vmem:[%s1183_s15] sm:$0xff] %v800_v49  ;;  %v802_v52 = vmax.f32 %v786_v50, 0.0 }
 0x357   : > { %817 = vst [vmem:[%s1183_s15 + $0x8] sm:$0xff] %v801_v51  ;;  %v803_v54 = vmax.f32 %v787_v5, 0.0  ;;  %v755_v55 = vpop.f32.mrb[8].mxu0 }
 0x358   : > { %818 = vst [vmem:[%s1183_s15 + $0x10] sm:$0xff] %v802_v52  ;;  %v756_v43 = vadd.f32 %v755_v55, %v652_v53  ;;  %v757_v56 = vpop.f32.mrb[9].mxu0 }
 0x359   : > { %819 = vst [vmem:[%s1183_s15 + $0x18] sm:$0xff] %v803_v54  ;;  %v758_v3 = vadd.f32 %v757_v56, %v652_v53  ;;  %v759_v57 = vpop.f32.mrb[10].mxu0 }
 0x35a   : > { %v788_v7 = vadd.f32 %v756_v43, %v1049_v12  ;;  %v760_v58 = vadd.f32 %v759_v57, %v657_v42  ;;  %v761_v4 = vpop.f32.mrb[11].mxu0 }
 0x35b   : > { %v789_v59 = vadd.f32 %v758_v3, %v1041_v8  ;;  %v762_v60 = vadd.f32 %v761_v4, %v657_v42 }
 0x35c   : > { %v804_v61 = vmax.f32 %v788_v7, 0.0  ;;  %v790_v62 = vadd.f32 %v760_v58, %v1051_v13 }
 0x35d   : > { %v805_v63 = vmax.f32 %v789_v59, 0.0  ;;  %v791_v1 = vadd.f32 %v762_v60, %v1043_v9 }
 0x35e   : > { %820 = vst [vmem:[%s1183_s15 + $0x20] sm:$0xff] %v804_v61  ;;  %v806_v2 = vmax.f32 %v790_v62, 0.0 }
 0x35f   : > { %821 = vst [vmem:[%s1183_s15 + $0x28] sm:$0xff] %v805_v63  ;;  %v807_v10 = vmax.f32 %v791_v1, 0.0  ;;  %v765_v11 = vpop.f32.mrb[12].mxu0 }
 0x360   : > { %822 = vst [vmem:[%s1183_s15 + $0x30] sm:$0xff] %v806_v2  ;;  %v766_v12 = vadd.f32 %v765_v11, %v662_v6  ;;  %v767_v16 = vpop.f32.mrb[13].mxu0 }
 0x361   : > { %823 = vst [vmem:[%s1183_s15 + $0x38] sm:$0xff] %v807_v10  ;;  %v768_v8 = vadd.f32 %v767_v16, %v662_v6  ;;  %v769_v22 = vpop.f32.mrb[14].mxu0 }
 0x362   : > { %v792_v13 = vadd.f32 %v766_v12, %v1061_v18  ;;  %v770_v23 = vadd.f32 %v769_v22, %v667_v17  ;;  %v771_v9 = vpop.f32.mrb[15].mxu0 }
 0x363   : > { %v793_v26 = vadd.f32 %v768_v8, %v1053_v14  ;;  %v772_v27 = vadd.f32 %v771_v9, %v667_v17  ;;  %v677_v14 = vpop.permute.xlu1 %676 }
 0x364   : > { %v808_v28 = vmax.f32 %v792_v13, 0.0  ;;  %v794_v29 = vadd.f32 %v770_v23, %v1063_v19 }
 0x365   : > { %v809_v30 = vmax.f32 %v793_v26, 0.0  ;;  %v795_v31 = vadd.f32 %v772_v27, %v1055_v15 }
 0x366   : > { %824 = vst [vmem:[%s1183_s15 + $0x40] sm:$0xff] %v808_v28  ;;  %v810_v32 = vmax.f32 %v794_v29, 0.0 }
 0x367   : > { %825 = vst [vmem:[%s1183_s15 + $0x48] sm:$0xff] %v809_v30  ;;  %v811_v34 = vmax.f32 %v795_v31, 0.0  ;;  %v775_v35 = vpop.f32.mrb[16].mxu0 }
 0x368   : > { %826 = vst [vmem:[%s1183_s15 + $0x50] sm:$0xff] %v810_v32  ;;  %v776_v18 = vadd.f32 %v775_v35, %v672_v33  ;;  %v777_v36 = vpop.f32.mrb[17].mxu0 }
 0x369   : > { %827 = vst [vmem:[%s1183_s15 + $0x58] sm:$0xff] %v811_v34  ;;  %v778_v37 = vadd.f32 %v777_v36, %v672_v33  ;;  %v779_v19 = vpop.f32.mrb[18].mxu0 }
 0x36a   : > { %v796_v38 = vadd.f32 %v776_v18, %v1073_v24  ;;  %v780_v15 = vadd.f32 %v779_v19, %v677_v14  ;;  %v781_v39 = vpop.f32.mrb[19].mxu0 }
 0x36b   : > { %v797_v40 = vadd.f32 %v778_v37, %v1065_v20  ;;  %v782_v41 = vadd.f32 %v781_v39, %v677_v14 }
 0x36c   : > { %v812_v44 = vmax.f32 %v796_v38, 0.0  ;;  %v798_v45 = vadd.f32 %v780_v15, %v1075_v25 }
 0x36d   : > { %v813_v46 = vmax.f32 %v797_v40, 0.0  ;;  %v799_v47 = vadd.f32 %v782_v41, %v1067_v21 }
 0x36e   : > { %828 = vst [vmem:[%s1183_s15 + $0x60] sm:$0xff] %v812_v44  ;;  %v814_v0 = vmax.f32 %v798_v45, 0.0 }
 0x36f   : > { %829 = vst [vmem:[%s1183_s15 + $0x68] sm:$0xff] %v813_v46  ;;  %v815_v48 = vmax.f32 %v799_v47, 0.0 }
 0x370   : > { %830 = vst [vmem:[%s1183_s15 + $0x70] sm:$0xff] %v814_v0 }
 0x371   : > { %831 = vst [vmem:[%s1183_s15 + $0x78] sm:$0xff] %v815_v48 }
 0x372 PF: > { %s17_s24 = sadd.s32 1, %s955_s24  }
 0x373   : > { %p14_p4 = scmp.ge.s32.totalorder %s17_s24, 4  }
 0x375   :  { %16 = sbr.rel (!%p14_p4) target bundleno = 1 (0x1), region = 78 }

</bundles_post_ra>
